<compile_context>
chip_gen: v6e
topology: v6e:2x2x1
jax: 0.10.0
libtpu: 0.0.40
codegen_flags: <defaults>
</compile_context>

<pallas_src>
import jax
import jax.numpy as jnp
from jax.experimental import pallas as pl
from jax.experimental.pallas import tpu as pltpu


def _cgm_kernel(gamma_ref, feat_ref, map_ref, out_ref):
    # gamma_ref: (1,)       SMEM scalar
    # feat_ref : (1, TC, N) VMEM, input dtype
    # map_ref  : (1, K,  N) VMEM
    # out_ref  : (1, TC, N) VMEM
    feat = feat_ref[0]                                   # (TC, N)
    m = map_ref[0, 1:2, :].astype(feat.dtype)            # (1, N)  seg channel 1

    # attention[c] = <feature[c, :], map[1, :]>  -- MXU contraction over N,
    # accumulated in f32 (no (C, N) f32 intermediate, VPU/XLU left free).
    att = jax.lax.dot_general(
        feat, m,
        (((1,), (1,)), ((), ())),                        # contract N with N
        preferred_element_type=jnp.float32)              # (TC, 1)
    att = jax.nn.sigmoid(att)                            # (TC, 1), EUP

    # gamma * (att * feat) + feat == (1 + gamma * att) * feat : one VPU pass.
    scale = (1.0 + gamma_ref[0] * att).astype(feat.dtype)  # (TC, 1)
    out_ref[0] = feat * scale


def cgm_forward(feature, seg_map, gamma, *, channel_tile=None,
                target_tile_bytes=4 * 1024 * 1024):
    """feature: (B, C, H, W), seg_map: (B, K, H, W) with K >= 2, gamma: (1,)."""
    B, C, H, W = feature.shape
    Bm, K, Hm, Wm = seg_map.shape
    assert (Bm, Hm, Wm) == (B, H, W), "feature / map spatial mismatch"
    assert K >= 2, "CGM uses seg_map channel 1 as the foreground map"
    N = H * W

    feat_flat = feature.reshape(B, C, N)   # free bitcast
    map_flat = seg_map.reshape(B, K, N)    # free bitcast
    gamma = jnp.asarray(gamma).reshape((1,)).astype(jnp.float32)

    # Channel tile: largest multiple of 8 keeping a feature tile near
    # `target_tile_bytes`.  Double-buffered feature-in + out tiles (plus the
    # small map) then fit comfortably inside the 32 MiB scoped-VMEM cap on all
    # of v5e / v6e / v7x while staying multi-MiB for HBM efficiency.
    if channel_tile is None:
        itemsize = jnp.dtype(feature.dtype).itemsize
        tc = max(1, target_tile_bytes // max(1, N * itemsize))
        tc = max(8, (tc // 8) * 8)
        channel_tile = C if tc >= C else tc
    tc = channel_tile
    n_ct = pl.cdiv(C, tc)

    out_flat = pl.pallas_call(
        _cgm_kernel,
        out_shape=jax.ShapeDtypeStruct((B, C, N), feature.dtype),
        grid=(B, n_ct),
        in_specs=[
            pl.BlockSpec(memory_space=pltpu.SMEM),                  # gamma
            pl.BlockSpec((1, tc, N), lambda b, c: (b, c, 0)),       # feature tile
            pl.BlockSpec((1, K, N), lambda b, c: (b, 0, 0)),        # seg map (all K)
        ],
        out_specs=pl.BlockSpec((1, tc, N), lambda b, c: (b, c, 0)),
        compiler_params=pltpu.CompilerParams(
            dimension_semantics=("parallel", "parallel"),
            vmem_limit_bytes=32 * 1024 * 1024),
    )(gamma, feat_flat, map_flat)

    return out_flat.reshape(B, C, H, W)


def cgm_reference(feature, seg_map, gamma):
    """Pure-JAX reference mirroring the PyTorch forward exactly."""
    B, C, H, W = feature.shape
    m = seg_map[:, 1, :, :].reshape(B, 1, H * W)                    # (B, 1, N)
    q = feature.reshape(B, C, H * W)                                # (B, C, N)
    att = jnp.einsum("bcn,bkn->bck", q, m)                          # (B, C, 1)
    att = jax.nn.sigmoid(att)[:, :, :, None]                        # (B, C, 1, 1)
    out = att * feature
    return gamma[0] * out + feature


if __name__ == "__main__":
    key = jax.random.PRNGKey(0)
    k1, k2, k3, k4 = jax.random.split(key, 4)

    # Case 1: small demo shapes (single C-tile).
    B, C, H, W, K = 2, 4, 16, 16, 2
    feature = jax.random.normal(k1, (B, C, H, W), dtype=jnp.float32)
    seg_map = jax.nn.softmax(
        jax.random.normal(k2, (B, K, H, W), dtype=jnp.float32), axis=1)

    # Module init is gamma = zeros(1); also test a nonzero gamma so the
    # attention path is actually exercised.
    for g in (0.0, 0.7):
        gamma = jnp.full((1,), g, dtype=jnp.float32)
        out = jax.block_until_ready(cgm_forward(feature, seg_map, gamma))
        ref = cgm_reference(feature, seg_map, gamma)
        assert out.shape == feature.shape
        assert jnp.allclose(out, ref, atol=1e-5, rtol=1e-5), (
            f"mismatch (case 1) at gamma={g}")

    # Case 2: exercise the channel-tiled path, including a ragged last C-tile.
    B2, C2, H2, W2 = 2, 20, 16, 16
    feature2 = jax.random.normal(k3, (B2, C2, H2, W2), dtype=jnp.float32)
    seg_map2 = jax.nn.softmax(
        jax.random.normal(k4, (B2, K, H2, W2), dtype=jnp.float32), axis=1)
    gamma2 = jnp.full((1,), 0.3, dtype=jnp.float32)
    out2 = jax.block_until_ready(
        cgm_forward(feature2, seg_map2, gamma2, channel_tile=8))
    ref2 = cgm_reference(feature2, seg_map2, gamma2)
    assert jnp.allclose(out2, ref2, atol=1e-5, rtol=1e-5), "mismatch (case 2)"

    print("KERNEL_OK")
</pallas_src>

<mosaic_0001>
module attributes {stable_mosaic.version = 11 : i64} {
  func.func @_cgm_kernel(%arg0: i32, %arg1: i32, %arg2: memref<1xf32, #tpu.memory_space<smem>>, %arg3: memref<1x4x256xf32, #tpu.memory_space<vmem>>, %arg4: memref<1x2x256xf32, #tpu.memory_space<vmem>>, %arg5: memref<1x4x256xf32, #tpu.memory_space<vmem>>) attributes {dimension_semantics = [#tpu.dimension_semantics<parallel>, #tpu.dimension_semantics<parallel>], iteration_bounds = array<i64: 2, 1>, scalar_prefetch = 0 : i64, scratch_operands = 0 : i64, tpu.core_type = #tpu.core_type<tc>, window_params = [{transform_indices = @transform_0, window_bounds = array<i64: 1>}, {transform_indices = @transform_1, window_bounds = array<i64: 1, 4, 256>}, {transform_indices = @transform_2, window_bounds = array<i64: 1, 2, 256>}, {transform_indices = @transform_3, window_bounds = array<i64: 1, 4, 256>}]} {
    %c0 = arith.constant 0 : index
    %c0_0 = arith.constant 0 : index
    %c0_1 = arith.constant 0 : index
    %0 = vector.load %arg3[%c0, %c0_0, %c0_1] : memref<1x4x256xf32, #tpu.memory_space<vmem>>, vector<1x4x256xf32>
    %1 = vector.shape_cast %0 : vector<1x4x256xf32> to vector<4x256xf32>
    %c0_2 = arith.constant 0 : index
    %c1 = arith.constant 1 : index
    %c0_3 = arith.constant 0 : index
    %2 = vector.load %arg4[%c0_2, %c1, %c0_3] : memref<1x2x256xf32, #tpu.memory_space<vmem>>, vector<1x1x256xf32>
    %3 = vector.shape_cast %2 : vector<1x1x256xf32> to vector<1x256xf32>
    %cst = arith.constant dense<0.000000e+00> : vector<4x1xf32>
    %4 = tpu.matmul %1, %3, %cst {dimension_numbers = #tpu.dot_dimension_numbers<[1], [1], [0], [0], [0, 0, 1, 0], [], []>} : vector<4x256xf32>, vector<1x256xf32>, vector<4x1xf32> -> vector<4x1xf32>
    %5 = arith.negf %4 : vector<4x1xf32>
    %6 = math.exp %5 : vector<4x1xf32>
    %cst_4 = arith.constant 1.000000e+00 : f32
    %7 = vector.broadcast %cst_4 : f32 to vector<4x1xf32>
    %8 = arith.addf %7, %6 : vector<4x1xf32>
    %9 = arith.divf %7, %8 : vector<4x1xf32>
    %c0_5 = arith.constant 0 : index
    %10 = memref.load %arg2[%c0_5] : memref<1xf32, #tpu.memory_space<smem>>
    %11 = vector.broadcast %10 : f32 to vector<4x1xf32>
    %12 = arith.mulf %11, %9 : vector<4x1xf32>
    %cst_6 = arith.constant 1.000000e+00 : f32
    %13 = vector.broadcast %cst_6 : f32 to vector<4x1xf32>
    %14 = arith.addf %13, %12 : vector<4x1xf32>
    %15 = vector.broadcast %14 : vector<4x1xf32> to vector<4x256xf32>
    %16 = arith.mulf %1, %15 : vector<4x256xf32>
    %c0_7 = arith.constant 0 : index
    %c0_8 = arith.constant 0 : index
    %c0_9 = arith.constant 0 : index
    %17 = vector.load %arg5[%c0_7, %c0_8, %c0_9] : memref<1x4x256xf32, #tpu.memory_space<vmem>>, vector<1x4x256xf32>
    %18 = vector.shape_cast %17 : vector<1x4x256xf32> to vector<4x256xf32>
    %19 = vector.shape_cast %16 : vector<4x256xf32> to vector<1x4x256xf32>
    tpu.vector_store %arg5[%c0_7, %c0_8, %c0_9], %19 {strides = array<i32>} : memref<1x4x256xf32, #tpu.memory_space<vmem>>, vector<1x4x256xf32>,
    return
  }
  func.func @transform_0(%arg0: i32, %arg1: i32) -> i32 {
    %c0_i32 = arith.constant 0 : i32
    %c0_i32_0 = arith.constant 0 : i32
    return %c0_i32 : i32
  }
  func.func @transform_1(%arg0: i32, %arg1: i32) -> (i32, i32, i32) {
    %c0_i32 = arith.constant 0 : i32
    %c0_i32_0 = arith.constant 0 : i32
    return %arg0, %arg1, %c0_i32 : i32, i32, i32
  }
  func.func @transform_2(%arg0: i32, %arg1: i32) -> (i32, i32, i32) {
    %c0_i32 = arith.constant 0 : i32
    %c0_i32_0 = arith.constant 0 : i32
    %c0_i32_1 = arith.constant 0 : i32
    return %arg0, %c0_i32, %c0_i32_0 : i32, i32, i32
  }
  func.func @transform_3(%arg0: i32, %arg1: i32) -> (i32, i32, i32) {
    %c0_i32 = arith.constant 0 : i32
    %c0_i32_0 = arith.constant 0 : i32
    return %arg0, %arg1, %c0_i32 : i32, i32, i32
  }
}

</mosaic_0001>

<bundles_post_ra>
// kernel: tpu_custom_call.1
= control target key start
LH: loop header
LB: loop body
LE: loop exit
PB: predicated region body
PF: predicated region fallthrough
CT: control target
= control target key end

     0   :  { %s846_s0 = inlined_call_operand.<no memory space> [shape: f32[1], index: 0, kind: input, shape index: {}]   ;;  %s847_s1 = inlined_call_operand.hbm [shape: f32[2,4,256], index: 1, kind: input, shape index: {}]   ;;  %s848_s2 = inlined_call_operand.hbm [shape: f32[2,2,256], index: 2, kind: input, shape index: {}]   ;;  %s849_s3 = inlined_call_operand.hbm [shape: f32[2,4,256], index: 3, kind: output, shape index: {}]  }
   0x1   :  { %8 = sst [smem:[#allocation2]] %s846_s0 }
   0x2   :  { %9 = vsyncpa [#allocation4], 0 }
   0x3   :  { %11 = vsyncpa [#allocation4 + $0x1], 0 }
   0x4   :  { %12 = vsyncpa [#allocation7], 0 }
   0x5   :  { %14 = vsyncpa [#allocation7 + $0x1], 0 }
   0x6   :  { %15 = vsyncpa [#allocation5], 0 }
   0x7   :  { %17 = vsyncpa [#allocation5 + $0x1], 0  ;;  %s678_s14 = smov 0   ;;  %s680_s15 = smov 0  }
   0x8   :  { %s682_s16 = smov 0   ;;  %s684_s17 = smov 0  }
   0x9   :  { %s686_s18 = smov 0   ;;  %s688_s19 = smov 0  }
   0xa LB: > { %s413_s0 = sadd.s32 4294967295, %s649_s19   ;;  %s414_s20 = sadd.s32 4294967294, %s649_s19   ;;  %s649_s19 = sphi %s688_s19, %s23_s19   ;;  %s645_s18 = sphi %s686_s18, %s861_s18   ;;  %s641_s17 = sphi %s684_s17, %s860_s17   ;;  %s637_s16 = sphi %s682_s16, %s859_s16   ;;  %s633_s15 = sphi %s680_s15, %s858_s15   ;;  %s629_s14 = sphi %s678_s14, %s857_s14  }
   0xb   : > { %s35_s21 = sadd.s32 1, %s645_s18  ;;  %s65_s22 = sadd.s32 1, %s637_s16 }
   0xc   : > { %p37_p0 = scmp.ge.s32.totalorder %s35_s21, 2  ;;  %p72_p1 = scmp.ne.s32.totalorder %s637_s16, %s633_s15 }
   0xd   : > { %p73_p2 = scmp.eq.s32.totalorder %s649_s19, 0  ;;  %p78_p3 = scmp.ne.s32.totalorder %s633_s15, %s629_s14 }
   0xe   : > { %s863_s21 = smov (%p37_p0, %s35_s21), 0  ;;  %p79_p5 = scmp.eq.s32.totalorder %s413_s0, 0 }
   0xf   : > { %p719_p4 = por %p73_p2, %p72_p1  ;;  %s60_s24 = ssub.s32 %s645_s18, %s863_s21 }
  0x10   : > { %p130_p6 = scmp.eq.s32.totalorder %s413_s0, 1  ;;  %p63_p7 = scmp.eq.s32.totalorder %s60_s24, 0 }
  0x11   : > { %p725_p8 = por %p79_p5, %p78_p3  ;;  %p136_p10 = scmp.eq.s32.totalorder %s414_s20, 1 }
  0x12   : > { %p729_p9 = por %p130_p6, %p72_p1  ;;  %p454_p13 = scmp.lt.s32.totalorder %s649_s19, 2 }
  0x13   : > { %s734_s27 = scalar_select %p63_p7, %s637_s16, %s65_s22  }
  0x14   : > { %p736_p11 = por %p136_p10, %p78_p3  ;;  %s743_s29 = sand.u32 1, %s637_s16  }
  0x15   : > { %s417_s30 = sshll.u32 %s743_s29, 3  ;;  %s434_s4 = sshll.u32 %s645_s18, 7 }
  0x16   : > { %s171_s7 = scalar_lea.hbm %s847_s1, %s434_s4  ;;  %s163_s8 = scalar_lea.vmem [#allocation3], %s417_s30 }
  0x17   : > { %s173_s9 = sshll.u32 %s163_s8, 4  ;;  %p752_p0 = pnand %p454_p13, %p719_p4  ;;  %s174_s9 = int_to_ptr.vmem [resolvable:$true] %s173_s9 }
  0x18   : > { %p423_p1 = scmp.ge.s32.totalorder %s649_s19, 1  ;;  %p197_p2 = scmp.lt.s32.totalorder %s649_s19, 3 }
  0x19   : > { %s160_s11 = scalar_lea.sflag [#allocation4], %s743_s29  ;;  %p511_p3 = pneg %p752_p0 }
  0x1a   : > { %s522_s12 = scalar_lea.vmem %s174_s9, 128  ;;  %s651_s13 = smov [#allocation3]  }
  0x1b   : > { %p523_p5 = scmp.ne.s32.totalorder %s174_s9, %s522_s12  ;;  %s527_s0 = sshll.u32 %s651_s13, 4  ;;  %s528_s0 = int_to_ptr.vmem [resolvable:$false] %s527_s0 }
  0x1c   : > { %s529_s20 = scalar_lea.vmem %s528_s0, 256  ;;  %p530_p4 = scmp.lt.s32.totalorder %s174_s9, %s528_s0 }
  0x1d   : > { %p525_p6 = pnand %p523_p5, %p511_p3  ;;  %p531_p10 = scmp.lt.s32.totalorder %s529_s20, %s522_s12 }
  0x1f   : > { %p526_p7 = pneg %p525_p6  ;;  %p532_p13 = por %p531_p10, %p530_p4 }
  0x21   : > { %p533_p12 = pnand %p532_p13, %p526_p7 }
  0x23   : > { %536 = shalt.err (!%p533_p12)
}
  0x24   : > { %446 = dma.hbm_to_vmem [thread:$0]  (!%p752_p0), %s171_s7, 128, %s174_s9, %s160_s11  }
  0x25   : > { %p770_p5 = pnand %p423_p1, %p197_p2  ;;  %s420_s23 = sshll.u32 %s743_s29, 2 }
  0x26   : > { %s435_s24 = sshll.u32 %s645_s18, 6  ;;  %s184_s6 = scalar_lea.vmem [#allocation6], %s420_s23 }
  0x27   : > { %s190_s5 = scalar_lea.hbm %s848_s2, %s435_s24  ;;  %s192_s8 = sshll.u32 %s184_s6, 4  ;;  %s193_s8 = int_to_ptr.vmem [resolvable:$true] %s192_s8 }
  0x28   : > { %s181_s12 = scalar_lea.sflag [#allocation7], %s743_s29  ;;  %s550_s13 = scalar_lea.vmem %s193_s8, 64 }
  0x29   : > { %p551_p12 = scmp.ne.s32.totalorder %s193_s8, %s550_s13  ;;  %s652_s7 = smov [#allocation6]  }
  0x2a   : > { %s555_s9 = sshll.u32 %s652_s7, 4  ;;  %s556_s9 = int_to_ptr.vmem [resolvable:$false] %s555_s9 }
  0x2b   : > { %p553_p6 = pnand %p551_p12, %p511_p3  ;;  %s557_s11 = scalar_lea.vmem %s556_s9, 128 }
  0x2c   : > { %p558_p1 = scmp.lt.s32.totalorder %s193_s8, %s556_s9  ;;  %p559_p2 = scmp.lt.s32.totalorder %s557_s11, %s550_s13 }
  0x2d   : > { %p554_p7 = pneg %p553_p6 }
  0x2e   : > { %p560_p4 = por %p559_p2, %p558_p1 }
  0x30   : > { %p561_p10 = pnand %p560_p4, %p554_p7 }
  0x32   : > { %564 = shalt.err (!%p561_p10)
}
  0x33   : > { %449 = dma.hbm_to_vmem [thread:$0]  (!%p752_p0), %s190_s5, 64, %s193_s8, %s181_s12  }
  0x34   : > { %201 = sbr.rel (%p770_p5) target bundleno = 269 (0x10d), region = 32  ;;  %s788_s29 = sand.u32 (!%p770_p5), 1, %s633_s15  }
  0x35   : > { %s424_s0 = sshll.u32 (!%p770_p5), %s788_s29, 3  ;;  %s204_s20 = scalar_lea.sflag (!%p770_p5), [#allocation4], %s788_s29 }
  0x36   : > { %s207_s23 = scalar_lea.vmem (!%p770_p5), [#allocation3], %s424_s0 }
  0x39   : > { %616 = dma.done.wait (%p725_p8), %s204_s20, 128  }
  0x3a   : > { %618 = vsyncadd (%p725_p8), %s204_s20, 4294967168  ;;  %s425_s10 = sshll.u32 %s788_s29, 2  ;;  %s213_s22 = scalar_lea.sflag [#allocation7], %s788_s29 }
  0x3b   : > { %s216_s24 = scalar_lea.vmem [#allocation6], %s425_s10 }
  0x3c   : > { %620 = dma.done.wait (%p725_p8), %s213_s22, 64  }
  0x3d   : > { %622 = vsyncadd (%p725_p8), %s213_s22, 4294967232  ;;  %v248_v0 = vlaneseq  ;;  %v427_v4 = vld [vmem:[%s216_s24 + $0x1] ss:$2 sm:$0x3]  ;;  %v244_v7 = vld [vmem:[%s207_s23] sm:$0xff]  ;;  %vm262_vm0 = vcmask 1043456  }
  0x3e   : > { %s274_s25 = sld [smem:[#allocation2]]  ;;  %v653_v18 = vmov 839922192   ;;  %s436_s30 = sshll.u32 %s641_s17, 7 }
  0x3f   : > { %v249_v1 = vshrl.u32 %v248_v0, 7  ;;  %v280_v19 = vunpack.c.l.s4 %v653_v18  ;;  %s243_s4 = scalar_lea.vmem [#allocation8], %s424_s0  ;;  %s304_s12 = scalar_lea.hbm %s849_s3, %s436_s30 }
  0x40   : > { %s306_s5 = sshll.u32 %s243_s4, 4  ;;  %s290_s13 = scalar_lea.sflag [#allocation5], %s788_s29  ;;  %s307_s5 = int_to_ptr.vmem [resolvable:$true] %s306_s5 }
  0x41   : > { %v250_v2 = vsub.s32 0, %v249_v1  ;;  %v254_v3 = vsub.s32 1, %v249_v1  ;;  %v281_v20 = vunpack.c.0.s8 %v280_v19  ;;  %s565_s7 = scalar_lea.vmem %s307_s5, 128  ;;  %s654_s9 = smov [#allocation8]  }
  0x42   : > { %p566_p8 = scmp.ne.s32.totalorder %s307_s5, %s565_s7  ;;  %s569_s11 = sshll.u32 %s654_s9, 4  ;;  %s570_s11 = int_to_ptr.vmem [resolvable:$false] %s569_s11 }
  0x43   : > { %v251_v5 = vrot.slane %v427_v4, %v250_v2  ;;  %v255_v6 = vrot.slane %v427_v4, %v254_v3  ;;  %v284_v24 = vsub.s32 %v281_v20, %v249_v1  ;;  %s571_s17 = scalar_lea.vmem %s570_s11, 256  ;;  %p572_p13 = scmp.lt.s32.totalorder %s307_s5, %s570_s11 }
  0x44   : > { %v275_v21 = vstv %s274_s25  ;;  %p567_p0 = pnand %p566_p8, %p729_p9  ;;  %p573_p5 = scmp.lt.s32.totalorder %s571_s17, %s565_s7 }
  0x45   : > { %v256_v8 = vcombine.low %v251_v5, %v255_v6 }
  0x46   : > { %p568_p3 = pneg %p567_p0  ;;  %p574_p12 = por %p573_p5, %p572_p13 }
  0x47   : > { %v258_v9 = vmul.f32 %v256_v8, %v244_v7 }
  0x48   : > { %p575_p6 = pnand %p574_p12, %p568_p3 }
  0x49   : > { %v260_v10 = vcombine.high %v258_v9, %v258_v9  ;;  %v263_v11 = vsel %vm262_vm0, %v258_v9, 0.0 }
  0x4b   : > { %v264_v12 = vsel %vm262_vm0, %v260_v10, 0.0 }
  0x4c   : > { %v265_v13 = vadd.f32 %v264_v12, %v263_v11 }
  0x4e   : > { %266 = vadd.xlane.f32.xlu0 %v265_v13 }
  0xd7   : > { %v267_v14 = vpop.xlane.xlu0 %266 }
  0xd8   : > { %v428_v15 = vmul.f32 -1.442695, %v267_v14 }
  0xda   : > { %505 = vpow2.f32 %v428_v15 }
  0xe7   : > { %v506_v16 = vpop.eup %505 }
  0xe8   : > { %v271_v17 = vadd.f32 1.0, %v506_v16 }
  0xea   : > { %507 = vrcp.f32 %v271_v17 }
  0xf7   : > { %v508_v22 = vpop.eup %507 }
  0xf8   : > { %v276_v23 = vmul.f32 %v508_v22, %v275_v21 }
  0xfa   : > { %v277_v25 = vadd.f32 1.0, %v276_v23 }
  0xfc   : > { %v285_v26 = vrot.slane %v277_v25, %v284_v24 }
  0xfe   : > { %v287_v27 = vmul.f32 %v285_v26, %v244_v7 }
 0x100   : > { %288 = vst [vmem:[%s243_s4] sm:$0xff] %v287_v27 }
 0x101   : > { %578 = shalt.err (!%p575_p6)
}
 0x102   : > { %s579_s0 = scalar_lea.hbm %s304_s12, 128  ;;  %s583_s23 = scalar_lea.hbm %s849_s3, 256 }
 0x103   : > { %p580_p7 = scmp.ne.s32.totalorder %s304_s12, %s579_s0  ;;  %p584_p4 = scmp.lt.s32.totalorder %s304_s12, %s849_s3 }
 0x104   : > { %p585_p10 = scmp.lt.s32.totalorder %s583_s23, %s579_s0 }
 0x105   : > { %p581_p1 = pnand %p580_p7, %p729_p9 }
 0x106   : > { %p586_p8 = por %p585_p10, %p584_p4 }
 0x107   : > { %p582_p2 = pneg %p581_p1 }
 0x109   : > { %p587_p0 = pnand %p586_p8, %p582_p2 }
 0x10b   : > { %590 = shalt.err (!%p587_p0)
}
 0x10c   : > { %441 = dma.vmem_to_hbm [thread:$0]  (%p729_p9), %s307_s5, 128, %s304_s12, %s290_s13  }
 0x10d PF: > { %s318_s24 = sand.u32 1, %s629_s14   ;;  %p856_p3 = scmp.ge.s32.totalorder %s649_s19, 2 }
 0x10e   : > { %s319_s25 = scalar_lea.sflag [#allocation5], %s318_s24 }
 0x10f   : > { %p451_p13 = pnand %p856_p3, %p736_p11 }
 0x111   : > { %p452_p5 = pneg %p451_p13 }
 0x113   : > { %624 = dma.done.wait (%p452_p5), %s319_s25, 128  }
 0x114   : > { %626 = vsyncadd (%p452_p5), %s319_s25, 4294967168  ;;  %s23_s19 = sadd.s32 1, %s649_s19   ;;  %s857_s14 = smov %s633_s15 }
 0x115   : > { %p20_p12 = scmp.ge.s32.totalorder %s23_s19, 4   ;;  %s858_s15 = smov %s637_s16 }
 0x116   : > { %s859_s16 = smov %s734_s27  ;;  %s860_s17 = smov %s645_s18 }
 0x117   : > { %s861_s18 = smov %s863_s21  ;;  %22 = sbr.rel (!%p20_p12) target bundleno = 10 (0xa), region = 91 }
 0x11c   :  { %324 = vsyncpa [#allocation4], 1 }
 0x11d   :  { %326 = vsyncpa [#allocation4 + $0x1], 1 }
 0x11e   :  { %327 = vsyncpa [#allocation7], 1 }
 0x11f   :  { %329 = vsyncpa [#allocation7 + $0x1], 1 }
 0x120   :  { %330 = vsyncpa [#allocation5], 1 }
 0x121   :  { %332 = vsyncpa [#allocation5 + $0x1], 1 }

</bundles_post_ra>
